<compile_context>
chip_gen: v7x
topology: tpu7x:2x2x1
jax: 0.10.0
libtpu: 0.0.40
codegen_flags: <defaults>
</compile_context>

<pallas_src>
import functools

import jax
import jax.numpy as jnp
from jax import lax
from jax.experimental import pallas as pl
from jax.experimental.pallas import tpu as pltpu

EPS = 1e-5            # nn.LayerNorm default eps
MAX_ROW_TILE = 256    # rows per grid step (amortizes ~0.35us per-step overhead)


def _mix_bits(x):
    """murmur3-style finalizer on uint32 arrays (portable PRNG, no pltpu.prng_*)."""
    x = x ^ (x >> jnp.uint32(16))
    x = x * jnp.uint32(0x85EBCA6B)
    x = x ^ (x >> jnp.uint32(13))
    x = x * jnp.uint32(0xC2B2AE35)
    x = x ^ (x >> jnp.uint32(16))
    return x


def _fused_sublayer_kernel(seed_ref, x_ref, g_ref, b_ref, w_ref, bias_ref, o_ref,
                           *, rate, row_tile, hidden):
    # ---- LayerNorm (f32 math; v5e has no bf16 VPU/EUP) ----------------------
    x = x_ref[...].astype(jnp.float32)
    mean = jnp.mean(x, axis=-1, keepdims=True)
    xc = x - mean
    var = jnp.mean(xc * xc, axis=-1, keepdims=True)
    y = xc * lax.rsqrt(var + EPS) * g_ref[...] + b_ref[...]

    # ---- sublayer: linear projection on the MXU (f32 accumulate) ------------
    # (for v6e/v7x, casting y / W to bf16 here halves HBM bytes & feeds the
    #  bf16-native MXU; kept f32 for exact parity with the PyTorch reference)
    z = jnp.dot(y, w_ref[...], preferred_element_type=jnp.float32) + bias_ref[...]

    # ---- dropout: counter-hash bits vs. integer keep-threshold --------------
    if rate > 0.0:
        keep = 1.0 - rate
        threshold = jnp.uint32(min(int(keep * 4294967296.0), 4294967295))
        base = pl.program_id(0) * (row_tile * hidden)          # unique per tile
        row = lax.broadcasted_iota(jnp.int32, z.shape, 0)
        col = lax.broadcasted_iota(jnp.int32, z.shape, 1)
        ctr = (base + row * hidden + col).astype(jnp.uint32)
        bits = _mix_bits(ctr ^ seed_ref[0].astype(jnp.uint32))
        z = jnp.where(bits < threshold, z * jnp.float32(1.0 / keep),
                      jnp.float32(0.0))

    # ---- residual ------------------------------------------------------------
    o_ref[...] = (y + z).astype(o_ref.dtype)


def sublayer_connection(x, gamma, beta, W, bvec, *, dropout_rate=0.0, seed=0):
    """x: [B, S, H].  Returns LN(x) + dropout(LN(x) @ W + b)."""
    B, S, H = x.shape
    R = B * S
    x2d = x.reshape(R, H)

    # Row tile: large (256) when possible, otherwise the whole (8-padded) input.
    if R > MAX_ROW_TILE:
        row_tile = MAX_ROW_TILE
    else:
        row_tile = max(8, ((R + 7) // 8) * 8)
    r_pad = ((R + row_tile - 1) // row_tile) * row_tile
    if r_pad != R:
        x2d = jnp.pad(x2d, ((0, r_pad - R), (0, 0)))   # tail rows masked out below

    g = gamma.reshape(1, H)
    b = beta.reshape(1, H)
    bias = bvec.reshape(1, H)
    seed_arr = jnp.asarray([seed], dtype=jnp.int32)

    kernel = functools.partial(_fused_sublayer_kernel,
                               rate=float(dropout_rate),
                               row_tile=row_tile, hidden=H)

    out = pl.pallas_call(
        kernel,
        out_shape=jax.ShapeDtypeStruct((r_pad, H), x.dtype),
        grid_spec=pltpu.PrefetchScalarGridSpec(
            num_scalar_prefetch=1,                       # dropout seed -> SMEM
            grid=(r_pad // row_tile,),
            in_specs=[
                pl.BlockSpec((row_tile, H), lambda i, seed: (i, 0)),   # x tile
                pl.BlockSpec((1, H), lambda i, seed: (0, 0)),          # gamma (resident)
                pl.BlockSpec((1, H), lambda i, seed: (0, 0)),          # beta  (resident)
                pl.BlockSpec((H, H), lambda i, seed: (0, 0)),          # W     (resident)
                pl.BlockSpec((1, H), lambda i, seed: (0, 0)),          # bias  (resident)
            ],
            out_specs=pl.BlockSpec((row_tile, H), lambda i, seed: (i, 0)),
        ),
        compiler_params=pltpu.CompilerParams(
            dimension_semantics=("parallel",)),          # megacore-shardable rows
    )(seed_arr, x2d, g, b, W, bias)

    return out[:R].reshape(B, S, H)


if __name__ == "__main__":
    B, S, H = 2, 8, 128
    dropout_p = 0.1

    key = jax.random.PRNGKey(0)
    kx, kw, kb = jax.random.split(key, 3)
    x = jax.random.normal(kx, (B, S, H), dtype=jnp.float32)

    # LayerNorm params: PyTorch default init (ones / zeros)
    gamma = jnp.ones((H,), dtype=jnp.float32)
    beta = jnp.zeros((H,), dtype=jnp.float32)

    # Deterministic sublayer: linear projection H -> H
    W = jax.random.normal(kw, (H, H), dtype=jnp.float32) * (1.0 / jnp.sqrt(H))
    bvec = jax.random.normal(kb, (H,), dtype=jnp.float32) * 0.01

    # --- correctness check vs. pure-JAX reference (dropout disabled) ---------
    out_eval = sublayer_connection(x, gamma, beta, W, bvec, dropout_rate=0.0, seed=0)
    out_eval = jax.block_until_ready(out_eval)

    def ref_forward(xr):
        mean = xr.mean(-1, keepdims=True)
        var = ((xr - mean) ** 2).mean(-1, keepdims=True)
        y = (xr - mean) / jnp.sqrt(var + EPS) * gamma + beta
        return y + (y @ W + bvec)

    ref = ref_forward(x)
    assert jnp.allclose(out_eval, ref, atol=1e-4, rtol=1e-4), (
        float(jnp.max(jnp.abs(out_eval - ref)))
    )

    # --- training-mode run with fused in-kernel dropout -----------------------
    out_train = sublayer_connection(x, gamma, beta, W, bvec,
                                    dropout_rate=dropout_p, seed=1234)
    out_train = jax.block_until_ready(out_train)
    assert out_train.shape == (B, S, H)
    assert bool(jnp.all(jnp.isfinite(out_train)))

    print("KERNEL_OK")
</pallas_src>

<mosaic_0001>
module attributes {stable_mosaic.version = 11 : i64} {
  func.func @_fused_sublayer_kernel(%arg0: i32, %arg1: memref<1xi32, #tpu.memory_space<smem>>, %arg2: memref<16x128xf32, #tpu.memory_space<vmem>>, %arg3: memref<1x128xf32, #tpu.memory_space<vmem>>, %arg4: memref<1x128xf32, #tpu.memory_space<vmem>>, %arg5: memref<128x128xf32, #tpu.memory_space<vmem>>, %arg6: memref<1x128xf32, #tpu.memory_space<vmem>>, %arg7: memref<16x128xf32, #tpu.memory_space<vmem>>) attributes {dimension_semantics = [#tpu.dimension_semantics<parallel>], iteration_bounds = array<i64: 1>, scalar_prefetch = 1 : i64, scratch_operands = 0 : i64, tpu.core_type = #tpu.core_type<tc>, window_params = [{transform_indices = @transform_0, window_bounds = array<i64: 16, 128>}, {pipeline_mode = #tpu.pipeline_mode<synchronous>, transform_indices = @transform_1, window_bounds = array<i64: 1, 128>}, {pipeline_mode = #tpu.pipeline_mode<synchronous>, transform_indices = @transform_2, window_bounds = array<i64: 1, 128>}, {pipeline_mode = #tpu.pipeline_mode<synchronous>, transform_indices = @transform_3, window_bounds = array<i64: 128, 128>}, {pipeline_mode = #tpu.pipeline_mode<synchronous>, transform_indices = @transform_4, window_bounds = array<i64: 1, 128>}, {transform_indices = @transform_5, window_bounds = array<i64: 16, 128>}]} {
    %c0 = arith.constant 0 : index
    %c0_0 = arith.constant 0 : index
    %0 = vector.load %arg2[%c0, %c0_0] : memref<16x128xf32, #tpu.memory_space<vmem>>, vector<16x128xf32>
    %cst = arith.constant dense<0.000000e+00> : vector<16xf32>
    %1 = vector.multi_reduction <add>, %0, %cst [1] : vector<16x128xf32> to vector<16xf32>
    %2 = vector.shape_cast %1 : vector<16xf32> to vector<16x1xf32>
    %cst_1 = arith.constant 1.280000e+02 : f32
    %3 = vector.broadcast %cst_1 : f32 to vector<16x1xf32>
    %4 = arith.divf %2, %3 : vector<16x1xf32>
    %5 = vector.broadcast %4 : vector<16x1xf32> to vector<16x128xf32>
    %6 = arith.subf %0, %5 : vector<16x128xf32>
    %7 = arith.mulf %6, %6 : vector<16x128xf32>
    %cst_2 = arith.constant dense<0.000000e+00> : vector<16xf32>
    %8 = vector.multi_reduction <add>, %7, %cst_2 [1] : vector<16x128xf32> to vector<16xf32>
    %9 = vector.shape_cast %8 : vector<16xf32> to vector<16x1xf32>
    %cst_3 = arith.constant 1.280000e+02 : f32
    %10 = vector.broadcast %cst_3 : f32 to vector<16x1xf32>
    %11 = arith.divf %9, %10 : vector<16x1xf32>
    %cst_4 = arith.constant 9.99999974E-6 : f32
    %12 = vector.broadcast %cst_4 : f32 to vector<16x1xf32>
    %13 = arith.addf %11, %12 : vector<16x1xf32>
    %14 = math.rsqrt %13 : vector<16x1xf32>
    %15 = vector.broadcast %14 : vector<16x1xf32> to vector<16x128xf32>
    %16 = arith.mulf %6, %15 : vector<16x128xf32>
    %c0_5 = arith.constant 0 : index
    %c0_6 = arith.constant 0 : index
    %17 = vector.load %arg3[%c0_5, %c0_6] : memref<1x128xf32, #tpu.memory_space<vmem>>, vector<1x128xf32>
    %18 = vector.broadcast %17 : vector<1x128xf32> to vector<16x128xf32>
    %19 = arith.mulf %16, %18 : vector<16x128xf32>
    %c0_7 = arith.constant 0 : index
    %c0_8 = arith.constant 0 : index
    %20 = vector.load %arg4[%c0_7, %c0_8] : memref<1x128xf32, #tpu.memory_space<vmem>>, vector<1x128xf32>
    %21 = vector.broadcast %20 : vector<1x128xf32> to vector<16x128xf32>
    %22 = arith.addf %19, %21 : vector<16x128xf32>
    %c0_9 = arith.constant 0 : index
    %c0_10 = arith.constant 0 : index
    %23 = vector.load %arg5[%c0_9, %c0_10] : memref<128x128xf32, #tpu.memory_space<vmem>>, vector<128x128xf32>
    %cst_11 = arith.constant dense<0.000000e+00> : vector<16x128xf32>
    %24 = tpu.matmul %22, %23, %cst_11 {dimension_numbers = #tpu.dot_dimension_numbers<[1], [0], [0], [1], [0, 0, 1, 1], [], []>} : vector<16x128xf32>, vector<128x128xf32>, vector<16x128xf32> -> vector<16x128xf32>
    %c0_12 = arith.constant 0 : index
    %c0_13 = arith.constant 0 : index
    %25 = vector.load %arg6[%c0_12, %c0_13] : memref<1x128xf32, #tpu.memory_space<vmem>>, vector<1x128xf32>
    %26 = vector.broadcast %25 : vector<1x128xf32> to vector<16x128xf32>
    %27 = arith.addf %24, %26 : vector<16x128xf32>
    %28 = arith.addf %22, %27 : vector<16x128xf32>
    %c0_14 = arith.constant 0 : index
    %c0_15 = arith.constant 0 : index
    %29 = vector.load %arg7[%c0_14, %c0_15] : memref<16x128xf32, #tpu.memory_space<vmem>>, vector<16x128xf32>
    tpu.vector_store %arg7[%c0_14, %c0_15], %28 {strides = array<i32>} : memref<16x128xf32, #tpu.memory_space<vmem>>, vector<16x128xf32>,
    return
  }
  func.func @transform_0(%arg0: i32, %arg1: memref<1xi32, #tpu.memory_space<smem>>) -> (i32, i32) {
    %c0_i32 = arith.constant 0 : i32
    %c0_i32_0 = arith.constant 0 : i32
    return %arg0, %c0_i32 : i32, i32
  }
  func.func @transform_1(%arg0: i32, %arg1: memref<1xi32, #tpu.memory_space<smem>>) -> (i32, i32) {
    %c0_i32 = arith.constant 0 : i32
    %c0_i32_0 = arith.constant 0 : i32
    %c0_i32_1 = arith.constant 0 : i32
    return %c0_i32, %c0_i32_0 : i32, i32
  }
  func.func @transform_2(%arg0: i32, %arg1: memref<1xi32, #tpu.memory_space<smem>>) -> (i32, i32) {
    %c0_i32 = arith.constant 0 : i32
    %c0_i32_0 = arith.constant 0 : i32
    %c0_i32_1 = arith.constant 0 : i32
    return %c0_i32, %c0_i32_0 : i32, i32
  }
  func.func @transform_3(%arg0: i32, %arg1: memref<1xi32, #tpu.memory_space<smem>>) -> (i32, i32) {
    %c0_i32 = arith.constant 0 : i32
    %c0_i32_0 = arith.constant 0 : i32
    %c0_i32_1 = arith.constant 0 : i32
    return %c0_i32, %c0_i32_0 : i32, i32
  }
  func.func @transform_4(%arg0: i32, %arg1: memref<1xi32, #tpu.memory_space<smem>>) -> (i32, i32) {
    %c0_i32 = arith.constant 0 : i32
    %c0_i32_0 = arith.constant 0 : i32
    %c0_i32_1 = arith.constant 0 : i32
    return %c0_i32, %c0_i32_0 : i32, i32
  }
  func.func @transform_5(%arg0: i32, %arg1: memref<1xi32, #tpu.memory_space<smem>>) -> (i32, i32) {
    %c0_i32 = arith.constant 0 : i32
    %c0_i32_0 = arith.constant 0 : i32
    return %arg0, %c0_i32 : i32, i32
  }
}

</mosaic_0001>

<bundles_post_ra>
// kernel: tpu_custom_call.1
= control target key start
LH: loop header
LB: loop body
LE: loop exit
PB: predicated region body
PF: predicated region fallthrough
CT: control target
= control target key end

     0   :  { %12 = vsyncpa [#allocation5], 0  ;;  %s477_s0 = inlined_call_operand.<no memory space> [shape: s32[1], index: 0, kind: input, shape index: {}]   ;;  %s478_s1 = inlined_call_operand.hbm [shape: f32[16,128], index: 1, kind: input, shape index: {}]   ;;  %s479_s2 = inlined_call_operand.vmem [shape: f32[1,128], index: 2, kind: input, shape index: {}]   ;;  %s480_s3 = inlined_call_operand.vmem [shape: f32[1,128], index: 3, kind: input, shape index: {}]   ;;  %s481_s4 = inlined_call_operand.hbm [shape: f32[128,128], index: 4, kind: input, shape index: {}]   ;;  %s482_s5 = inlined_call_operand.vmem [shape: f32[1,128], index: 5, kind: input, shape index: {}]   ;;  %s483_s6 = inlined_call_operand.hbm [shape: f32[16,128], index: 6, kind: output, shape index: {}]  }
   0x1   :  { %13 = vsyncpa [#allocation8], 0 }
   0x2   :  { %14 = vsyncpa [#allocation6], 0  ;;  %s383_s0 = smov [#allocation4]   ;;  %s311_s24 = scalar_lea.hbm %s478_s1, 256 }
   0x3   :  { %s20_s21 = sshll.u32 %s383_s0, 4  ;;  %p312_p0 = scmp.ne.s32.totalorder %s478_s1, %s311_s24  ;;  %s21_s21 = int_to_ptr.vmem [resolvable:$true] %s20_s21 }
   0x4   :  { %p315_p1 = scmp.lt.u32.totalorder %s311_s24, %s478_s1 }
   0x6   :  { %p317_p2 = pnand %p315_p1, %p312_p0 }
   0x8   :  { %320 = shalt.err (!%p317_p2)
}
   0x9   :  { %s321_s29 = scalar_lea.vmem %s21_s21, 256  ;;  %p326_p4 = scmp.lt.s32.totalorder %s21_s21, %s21_s21 }
   0xa   :  { %p322_p3 = scmp.ne.s32.totalorder %s21_s21, %s321_s29  ;;  %p327_p5 = scmp.lt.s32.totalorder %s321_s29, %s321_s29 }
   0xc   :  { %p328_p6 = por %p327_p5, %p326_p4 }
   0xe   :  { %p329_p7 = pnand %p328_p6, %p322_p3 }
  0x10   :  { %332 = shalt.err (!%p329_p7)
}
  0x11   :  { %s384_s30 = smov 128   ;;  %s385_s7 = smov 8  }
  0x12   :  { %26 = dma.hbm_to_vmem [thread:$0]  %s478_s1, 256, %s21_s21, [#allocation5], %s384_s30, %s384_s30, %s385_s7  }
  0x13   :  { %s386_s10 = smov [#allocation7]   ;;  %s333_s14 = scalar_lea.hbm %s481_s4, 2048 }
  0x14   :  { %s36_s11 = sshll.u32 %s386_s10, 4  ;;  %p334_p8 = scmp.ne.s32.totalorder %s481_s4, %s333_s14  ;;  %s37_s11 = int_to_ptr.vmem [resolvable:$true] %s36_s11 }
  0x15   :  { %p337_p9 = scmp.lt.u32.totalorder %s333_s14, %s481_s4 }
  0x17   :  { %p339_p10 = pnand %p337_p9, %p334_p8 }
  0x19   :  { %342 = shalt.err (!%p339_p10)
}
  0x1a   :  { %s343_s19 = scalar_lea.vmem %s37_s11, 2048  ;;  %p348_p12 = scmp.lt.s32.totalorder %s37_s11, %s37_s11 }
  0x1b   :  { %p344_p11 = scmp.ne.s32.totalorder %s37_s11, %s343_s19  ;;  %p349_p13 = scmp.lt.s32.totalorder %s343_s19, %s343_s19 }
  0x1d   :  { %p350_p0 = por %p349_p13, %p348_p12 }
  0x1f   :  { %p351_p1 = pnand %p350_p0, %p344_p11 }
  0x21   :  { %354 = shalt.err (!%p351_p1)
}
  0x22   :  { %42 = dma.hbm_to_vmem [thread:$0]  %s481_s4, 2048, %s37_s11, [#allocation8], %s384_s30, %s384_s30, %s385_s7  }
  0x23   :  { %377 = dma.done.wait [#allocation5], 256  }
  0x24   :  { %378 = vsyncadd [#allocation5], 4294967040 }
  0x25   :  { %379 = dma.done.wait [#allocation8], 2048  }
  0x26   :  { %380 = vsyncadd [#allocation8], 4294965248  ;;  %v51_v0 = vld [vmem:[#allocation4] sm:$0xff]  ;;  %v52_v1 = vld [vmem:[#allocation4 + $0x8] sm:$0xff] }
  0x27   :  { %53 = vadd.xlane.f32.xlu0 %v51_v0  ;;  %v94_v2 = vld [vmem:[#allocation7] sm:$0xff]  ;;  %v95_v3 = vld [vmem:[#allocation7 + $0x8] sm:$0xff]  ;;  %v96_v4 = vld [vmem:[#allocation7 + $0x10] sm:$0xff] }
  0x28   :  { %v270_v5 = vpack.c.bf16 %v95_v3, %v94_v2  ;;  %v97_v6 = vld [vmem:[#allocation7 + $0x18] sm:$0xff]  ;;  %v98_v16 = vld [vmem:[#allocation7 + $0x20] sm:$0xff]  ;;  %v99_v17 = vld [vmem:[#allocation7 + $0x28] sm:$0xff] }
  0x29   :  { %v274_v7 = vpack.c.bf16 %v97_v6, %v96_v4  ;;  %v278_v18 = vpack.c.bf16 %v99_v17, %v98_v16  ;;  %v100_v19 = vld [vmem:[#allocation7 + $0x30] sm:$0xff]  ;;  %v101_v20 = vld [vmem:[#allocation7 + $0x38] sm:$0xff]  ;;  %v102_v22 = vld [vmem:[#allocation7 + $0x40] sm:$0xff] }
  0x2a   :  { %271 = vmatprep.subr.bf16.mxu0 %v270_v5  ;;  %v282_v21 = vpack.c.bf16 %v101_v20, %v100_v19  ;;  %v103_v23 = vld [vmem:[#allocation7 + $0x48] sm:$0xff]  ;;  %v104_v25 = vld [vmem:[#allocation7 + $0x50] sm:$0xff]  ;;  %v105_v26 = vld [vmem:[#allocation7 + $0x58] sm:$0xff] }
  0x2b   :  { %55 = vadd.xlane.f32.xlu0 %v52_v1  ;;  %273 = vmatpush3.bf16.msra.mxu0 %v270_v5  ;;  %v286_v24 = vpack.c.bf16 %v103_v23, %v102_v22  ;;  %v106_v27 = vld [vmem:[#allocation7 + $0x60] sm:$0xff]  ;;  %v290_v28 = vpack.c.bf16 %v105_v26, %v104_v25  ;;  %v107_v29 = vld [vmem:[#allocation7 + $0x68] sm:$0xff]  ;;  %v108_v31 = vld [vmem:[#allocation7 + $0x70] sm:$0xff] }
  0x2c   :  { %275 = vmatprep.subr.bf16.mxu0 %v274_v7  ;;  %v294_v30 = vpack.c.bf16 %v107_v29, %v106_v27  ;;  %v109_v32 = vld [vmem:[#allocation7 + $0x78] sm:$0xff]  ;;  %v214_v41 = vld [vmem:[%s479_s2] ss:$0 sm:$0xff]  ;;  %s387_s2 = smov [#allocation9]  }
  0x2d   :  { %v298_v33 = vpack.c.bf16 %v109_v32, %v108_v31  ;;  %v215_v43 = vld [vmem:[%s480_s3] ss:$0 sm:$0xff]  ;;  %s201_s25 = sshll.u32 %s387_s2, 4  ;;  %s202_s25 = int_to_ptr.vmem [resolvable:$true] %s201_s25 }
  0x2e   :  { %v216_v50 = vld [vmem:[%s482_s5] ss:$0 sm:$0xff]  ;;  %s355_s3 = scalar_lea.vmem %s202_s25, 256  ;;  %p360_p3 = scmp.lt.s32.totalorder %s202_s25, %s202_s25 }
  0x2f   :  { %277 = vmatpush3.bf16.msra.mxu0 %v274_v7  ;;  %p356_p2 = scmp.ne.s32.totalorder %s202_s25, %s355_s3  ;;  %p361_p4 = scmp.lt.s32.totalorder %s355_s3, %s355_s3 }
  0x30   :  { %279 = vmatprep.subr.bf16.mxu0 %v278_v18 }
  0x31   :  { %p362_p5 = por %p361_p4, %p360_p3 }
  0x33   :  { %281 = vmatpush3.bf16.msra.mxu0 %v278_v18  ;;  %p363_p6 = pnand %p362_p5, %p356_p2 }
  0x34   :  { %283 = vmatprep.subr.bf16.mxu0 %v282_v21 }
  0x37   :  { %285 = vmatpush3.bf16.msra.mxu0 %v282_v21 }
  0x38   :  { %287 = vmatprep.subr.bf16.mxu0 %v286_v24 }
  0x3b   :  { %289 = vmatpush3.bf16.msra.mxu0 %v286_v24 }
  0x3c   :  { %291 = vmatprep.subr.bf16.mxu0 %v290_v28 }
  0x3f   :  { %293 = vmatpush3.bf16.msra.mxu0 %v290_v28 }
  0x40   :  { %295 = vmatprep.subr.bf16.mxu0 %v294_v30 }
  0x43   :  { %297 = vmatpush3.bf16.msra.mxu0 %v294_v30 }
  0x44   :  { %299 = vmatprep.subr.bf16.mxu0 %v298_v33 }
  0x47   :  { %301 = vmatpush3.bf16.msra.mxu0 %v298_v33 }
  0xb4   :  { %v54_v8 = vpop.xlane.xlu0 %53 }
  0xb5   :  { %v58_v9 = vmul.f32 0.0078125, %v54_v8 }
  0xb7   :  { %v60_v10 = vsub.f32 %v51_v0, %v58_v9 }
  0xb8   :  { %v56_v11 = vpop.xlane.xlu0 %55 }
  0xb9   :  { %v59_v12 = vmul.f32 0.0078125, %v56_v11  ;;  %v62_v13 = vmul.f32 %v60_v10, %v60_v10 }
  0xbb   :  { %v61_v14 = vsub.f32 %v52_v1, %v59_v12  ;;  %64 = vadd.xlane.f32.xlu1 %v62_v13 }
  0xbd   :  { %v63_v15 = vmul.f32 %v61_v14, %v61_v14 }
  0xbf   :  { %66 = vadd.xlane.f32.xlu1 %v63_v15 }
 0x148   :  { %v65_v34 = vpop.xlane.xlu1 %64 }
 0x149   :  { %v68_v35 = vmul.f32 0.0078125, %v65_v34 }
 0x14b   :  { %v70_v36 = vadd.f32 1e-05, %v68_v35 }
 0x14c   :  { %v67_v37 = vpop.xlane.xlu1 %66 }
 0x14d   :  { %307 = vrsqrt.f32 %v70_v36  ;;  %v69_v38 = vmul.f32 0.0078125, %v67_v37 }
 0x14f   :  { %v71_v39 = vadd.f32 1e-05, %v69_v38 }
 0x151   :  { %309 = vrsqrt.f32 %v71_v39 }
 0x157   :  { %v308_v40 = vpop.eup %307 }
 0x158   :  { %v74_v42 = vmul.f32 %v308_v40, %v60_v10 }
 0x15a   :  { %v83_v44 = vmul.f32 %v214_v41, %v74_v42 }
 0x15b   :  { %v310_v45 = vpop.eup %309 }
 0x15c   :  { %v75_v46 = vmul.f32 %v310_v45, %v61_v14  ;;  %v92_v47 = vadd.f32 %v215_v43, %v83_v44 }
 0x15e   :  { %v84_v48 = vmul.f32 %v214_v41, %v75_v46  ;;  %267 = vmatprep.mubr.f32.mxu0 %v92_v47 }
 0x160   :  { %v93_v49 = vadd.f32 %v215_v43, %v84_v48 }
 0x162   :  { %268 = vmatmul.mubr.f32.vlgmr.msra.gmra.mrb[0].mxu0 %v93_v49 }
 0x235   :  { %v269_v51 = vpop.f32.mrb[0].mxu0 }
 0x236   :  { %v189_v52 = vadd.f32 %v269_v51, %v216_v50  ;;  %v183_v53 = vpop.f32.mrb[1].mxu0 }
 0x237   :  { %v184_v54 = vadd.f32 %v216_v50, %v183_v53 }
 0x238   :  { %v193_v55 = vadd.f32 %v189_v52, %v93_v49 }
 0x239   :  { %v192_v56 = vadd.f32 %v184_v54, %v92_v47 }
 0x23a   :  { %195 = vst [vmem:[#allocation9 + $0x8] sm:$0xff] %v193_v55 }
 0x23b   :  { %194 = vst [vmem:[#allocation9] sm:$0xff] %v192_v56 }
 0x23c   :  { %366 = shalt.err (!%p363_p6)
}
 0x23d   :  { %s367_s27 = scalar_lea.hbm %s483_s6, 256 }
 0x23e   :  { %p368_p7 = scmp.ne.s32.totalorder %s483_s6, %s367_s27  ;;  %p371_p8 = scmp.lt.u32.totalorder %s367_s27, %s483_s6 }
 0x240   :  { %p373_p9 = pnand %p371_p8, %p368_p7 }
 0x242   :  { %376 = shalt.err (!%p373_p9)
}
 0x243   :  { %207 = dma.vmem_to_hbm [thread:$0]  %s202_s25, 256, %s483_s6, [#allocation6], %s384_s30, %s384_s30, %s385_s7  }
 0x244   :  { %381 = dma.done.wait [#allocation6], 256  }
 0x245   :  { %382 = vsyncadd [#allocation6], 4294967040 }
 0x246   :  { %211 = vsyncpa [#allocation5], 1 }
 0x247   :  { %212 = vsyncpa [#allocation8], 1 }
 0x248   :  { %213 = vsyncpa [#allocation6], 1 }

</bundles_post_ra>
